<compile_context>
chip_gen: v7x
topology: tpu7x:2x2x1
jax: 0.10.0
libtpu: 0.0.40
codegen_flags: <defaults>
</compile_context>

<pallas_src>
import jax
import jax.numpy as jnp
from jax.experimental import pallas as pl
from jax.experimental.pallas import tpu as pltpu

BN_EPS = 1e-5


def _softplus(x):
    # numerically stable softplus (f32, outside the kernel)
    return jnp.maximum(x, 0.0) + jnp.log1p(jnp.exp(-jnp.abs(x)))


def mlp_kernel(x_ref, wbr_ref, wf1_ref, vec_ref, d_ref):
    # Packed f32 row-vector slab (8, 2H):
    b_br = vec_ref[0:1, :]      # folded branch biases   [ba | bn]
    t_br = vec_ref[1:2, :]      # folded branch BN shift [ta | tn]
    bf1 = vec_ref[2:3, :]       # folded final-hidden bias
    tf = vec_ref[3:4, :]        # folded final-hidden BN shift
    wd = vec_ref[4:5, :]        # wf2[:,1] - wf2[:,0]
    bd = vec_ref[5:6, 0:1]      # bf2[1]  - bf2[0]

    # Fused branch GEMM: x=[xa|xn] (bf16) @ block-diag([wa,0],[0,wn]) (bf16),
    # f32 accumulate -> [ha|hn].  Dropout = identity (eval).
    h = jnp.dot(x_ref[...], wbr_ref[...], preferred_element_type=jnp.float32)
    h = jnp.maximum(h + b_br, 0.0) + t_br

    # Final hidden layer: (tb,2H) @ (2H,2H), bf16 operands, f32 accumulate.
    h = jnp.dot(h.astype(jnp.bfloat16), wf1_ref[...],
                preferred_element_type=jnp.float32)
    h = jnp.maximum(h + bf1, 0.0) + tf

    # 2-class logit difference (log-softmax finished in the wrapper).
    d_ref[...] = jnp.sum(h * wd, axis=1, keepdims=True) + bd


def fold_params(params, hidden_size):
    """Host-side: fold eval-mode BN into the Linears, fuse the two branch
    weights into a block-diagonal matrix, pack the vectors, cast weights to
    bf16 for the MXU path."""
    H = hidden_size
    H2 = 2 * H

    def fold(w, b, gamma, beta, mean, var):
        s = gamma * jax.lax.rsqrt(var + BN_EPS)
        # ReLU commutes with the scale only when s > 0 (holds for this init;
        # real trained BN could have gamma <= 0).
        assert bool(jnp.all(s > 0.0)), "BN fold requires gamma*rsqrt(var+eps)>0"
        return w * s, b * s, beta - mean * s

    wa, ba, ta = fold(params["wa"], params["ba"], params["ga"],
                      params["bta"], params["ma"], params["va"])
    wn, bn_, tn = fold(params["wn"], params["bn"], params["gn"],
                       params["btn"], params["mn"], params["vn"])
    wf1, bf1, tf = fold(params["wf1"], params["bf1"], params["gf"],
                        params["btf"], params["mf"], params["vf"])

    da, dn = wa.shape[0], wn.shape[0]
    # Block-diagonal branch weight: x=[xa|xn] @ w_branch == [xa@wa | xn@wn]
    w_branch = jnp.zeros((da + dn, H2), jnp.float32)
    w_branch = w_branch.at[:da, :H].set(wa).at[da:, H:].set(wn)

    b_branch = jnp.concatenate([ba, bn_], axis=1)      # (1, 2H)
    t_branch = jnp.concatenate([ta, tn], axis=1)       # (1, 2H)
    wd = (params["wf2"][:, 1] - params["wf2"][:, 0]).reshape(1, H2)
    bd = (params["bf2"][0, 1] - params["bf2"][0, 0]).reshape(1, 1)

    def pad_row(v):
        return jnp.pad(v, ((0, 0), (0, H2 - v.shape[1])))

    zeros = jnp.zeros((2, H2), jnp.float32)
    vecs = jnp.concatenate(
        [b_branch, t_branch, bf1, tf, wd, pad_row(bd), zeros], axis=0)  # (8,2H)

    return {"w_branch": w_branch.astype(jnp.bfloat16),
            "wf1": wf1.astype(jnp.bfloat16),
            "vecs": vecs}


def mlp_forward(x_abstracts, x_nodes, folded, *, block_batch=2048):
    batch = x_abstracts.shape[0]
    x = jnp.concatenate([x_abstracts, x_nodes], axis=1).astype(jnp.bfloat16)
    dx = x.shape[1]
    H2 = folded["wf1"].shape[1]

    # Tile: multiple of 8; at least 2 grid steps when the batch allows it so
    # dimension_semantics=("parallel",) uses both TensorCores on v7x.
    half = pl.cdiv(pl.cdiv(batch, 2), 8) * 8
    tb = max(8, min(block_batch, half))
    padded = pl.cdiv(batch, tb) * tb
    if padded != batch:
        x = jnp.pad(x, ((0, padded - batch), (0, 0)))
    grid = (padded // tb,)

    def resident(shape):
        return pl.BlockSpec(shape, lambda i: (0, 0))

    flops = 2 * padded * (dx * H2 + H2 * H2) + 4 * padded * H2
    bytes_accessed = (x.size * 2 + padded * 4
                      + folded["w_branch"].size * 2
                      + folded["wf1"].size * 2
                      + folded["vecs"].size * 4)

    d = pl.pallas_call(
        mlp_kernel,
        out_shape=jax.ShapeDtypeStruct((padded, 1), jnp.float32),
        grid=grid,
        in_specs=[
            pl.BlockSpec((tb, dx), lambda i: (i, 0)),
            resident(folded["w_branch"].shape),
            resident(folded["wf1"].shape),
            resident(folded["vecs"].shape),
        ],
        out_specs=pl.BlockSpec((tb, 1), lambda i: (i, 0)),
        compiler_params=pltpu.CompilerParams(
            dimension_semantics=("parallel",)),
        cost_estimate=pl.CostEstimate(flops=flops, transcendentals=0,
                                      bytes_accessed=bytes_accessed),
    )(x, folded["w_branch"], folded["wf1"], folded["vecs"])

    d = d[:batch]
    # Closed-form 2-class log-softmax from the logit difference (f32).
    sp = _softplus(d)
    return jnp.concatenate([-sp, d - sp], axis=1)


def init_params(key, abstract_emb_size, node_emb_size, hidden_size):
    """Deterministic synthetic parameter init (shapes match the torch module)."""
    ks = jax.random.split(key, 24)
    H = hidden_size

    def lin(kw, kb, fin, fout):
        scale = 1.0 / jnp.sqrt(fin)
        w = jax.random.uniform(kw, (fin, fout), jnp.float32, -scale, scale)
        b = jax.random.uniform(kb, (1, fout), jnp.float32, -scale, scale)
        return w, b

    def bn(kg, kb, km, kv, feat):
        gamma = jax.random.uniform(kg, (1, feat), jnp.float32, 0.5, 1.5)
        beta = jax.random.uniform(kb, (1, feat), jnp.float32, -0.5, 0.5)
        mean = jax.random.uniform(km, (1, feat), jnp.float32, -0.5, 0.5)
        var = jax.random.uniform(kv, (1, feat), jnp.float32, 0.5, 1.5)
        return gamma, beta, mean, var

    p = {}
    p["wa"], p["ba"] = lin(ks[0], ks[1], abstract_emb_size * 2, H)
    p["ga"], p["bta"], p["ma"], p["va"] = bn(ks[2], ks[3], ks[4], ks[5], H)
    p["wn"], p["bn"] = lin(ks[6], ks[7], node_emb_size * 2, H)
    p["gn"], p["btn"], p["mn"], p["vn"] = bn(ks[8], ks[9], ks[10], ks[11], H)
    p["wf1"], p["bf1"] = lin(ks[12], ks[13], 2 * H, 2 * H)
    p["gf"], p["btf"], p["mf"], p["vf"] = bn(ks[14], ks[15], ks[16], ks[17], 2 * H)
    p["wf2"], p["bf2"] = lin(ks[18], ks[19], 2 * H, 2)
    return p


def mlp_reference(x_abstracts, x_nodes, params):
    """Pure-JAX f32 reference on the ORIGINAL (unfolded) params."""
    def branch(x, w, b, gamma, beta, mean, var):
        h = jnp.maximum(x @ w + b, 0.0)
        return (h - mean) * jax.lax.rsqrt(var + BN_EPS) * gamma + beta

    ha = branch(x_abstracts, params["wa"], params["ba"],
                params["ga"], params["bta"], params["ma"], params["va"])
    hn = branch(x_nodes, params["wn"], params["bn"],
                params["gn"], params["btn"], params["mn"], params["vn"])
    h = jnp.concatenate([ha, hn], axis=1)
    h = branch(h, params["wf1"], params["bf1"],
               params["gf"], params["btf"], params["mf"], params["vf"])
    logits = h @ params["wf2"] + params["bf2"]
    return jax.nn.log_softmax(logits, axis=1)


def mlp_reference_folded_bf16(x_abstracts, x_nodes, folded):
    """Pure-JAX reference mirroring the kernel's bf16-operand / f32-acc math
    (tight check of the Pallas kernel itself)."""
    x = jnp.concatenate([x_abstracts, x_nodes], axis=1).astype(jnp.bfloat16)
    v = folded["vecs"]
    b_br, t_br, bf1, tf, wd = v[0:1], v[1:2], v[2:3], v[3:4], v[4:5]
    bd = v[5:6, 0:1]
    h = jnp.dot(x, folded["w_branch"], preferred_element_type=jnp.float32)
    h = jnp.maximum(h + b_br, 0.0) + t_br
    h = jnp.dot(h.astype(jnp.bfloat16), folded["wf1"],
                preferred_element_type=jnp.float32)
    h = jnp.maximum(h + bf1, 0.0) + tf
    d = jnp.sum(h * wd, axis=1, keepdims=True) + bd
    sp = _softplus(d)
    return jnp.concatenate([-sp, d - sp], axis=1)


if __name__ == "__main__":
    abstract_emb_size = 16
    node_emb_size = 8
    hidden_size = 32
    batch = 8

    key = jax.random.PRNGKey(0)
    k_xa, k_xn, k_p = jax.random.split(key, 3)
    x_abstracts = jax.random.normal(k_xa, (batch, abstract_emb_size * 2),
                                    jnp.float32)
    x_nodes = jax.random.normal(k_xn, (batch, node_emb_size * 2), jnp.float32)
    params = init_params(k_p, abstract_emb_size, node_emb_size, hidden_size)
    folded = fold_params(params, hidden_size)

    out = mlp_forward(x_abstracts, x_nodes, folded)
    out = jax.block_until_ready(out)
    assert out.shape == (batch, 2)

    # Tight check: kernel vs. a JAX impl of the same bf16-operand math.
    ref_bf16 = mlp_reference_folded_bf16(x_abstracts, x_nodes, folded)
    assert jnp.allclose(out, ref_bf16, atol=1e-4, rtol=1e-4), (
        f"bf16-matched max abs err {jnp.max(jnp.abs(out - ref_bf16))}")

    # Loose check: kernel vs. the full-precision f32 reference on the
    # original (unfolded) params (bf16 matmul operands -> ~1e-2 level error).
    ref_f32 = mlp_reference(x_abstracts, x_nodes, params)
    assert jnp.allclose(out, ref_f32, atol=1e-1, rtol=1e-1), (
        f"f32-ref max abs err {jnp.max(jnp.abs(out - ref_f32))}")

    print("KERNEL_OK")
</pallas_src>

<mosaic_0001>
module attributes {stable_mosaic.version = 11 : i64} {
  func.func @mlp_kernel(%arg0: i32, %arg1: memref<8x48xbf16, #tpu.memory_space<vmem>>, %arg2: memref<48x64xbf16, #tpu.memory_space<vmem>>, %arg3: memref<64x64xbf16, #tpu.memory_space<vmem>>, %arg4: memref<8x64xf32, #tpu.memory_space<vmem>>, %arg5: memref<8x1xf32, #tpu.memory_space<vmem>>) attributes {dimension_semantics = [#tpu.dimension_semantics<parallel>], iteration_bounds = array<i64: 1>, scalar_prefetch = 0 : i64, scratch_operands = 0 : i64, tpu.core_type = #tpu.core_type<tc>, window_params = [{transform_indices = @transform_0, window_bounds = array<i64: 8, 48>}, {pipeline_mode = #tpu.pipeline_mode<synchronous>, transform_indices = @transform_1, window_bounds = array<i64: 48, 64>}, {pipeline_mode = #tpu.pipeline_mode<synchronous>, transform_indices = @transform_2, window_bounds = array<i64: 64, 64>}, {pipeline_mode = #tpu.pipeline_mode<synchronous>, transform_indices = @transform_3, window_bounds = array<i64: 8, 64>}, {transform_indices = @transform_4, window_bounds = array<i64: 8, 1>}]} {
    %c0 = arith.constant 0 : index
    %c0_0 = arith.constant 0 : index
    %0 = vector.load %arg4[%c0, %c0_0] : memref<8x64xf32, #tpu.memory_space<vmem>>, vector<1x64xf32>
    %c1 = arith.constant 1 : index
    %c0_1 = arith.constant 0 : index
    %1 = vector.load %arg4[%c1, %c0_1] : memref<8x64xf32, #tpu.memory_space<vmem>>, vector<1x64xf32>
    %c2 = arith.constant 2 : index
    %c0_2 = arith.constant 0 : index
    %2 = vector.load %arg4[%c2, %c0_2] : memref<8x64xf32, #tpu.memory_space<vmem>>, vector<1x64xf32>
    %c3 = arith.constant 3 : index
    %c0_3 = arith.constant 0 : index
    %3 = vector.load %arg4[%c3, %c0_3] : memref<8x64xf32, #tpu.memory_space<vmem>>, vector<1x64xf32>
    %c4 = arith.constant 4 : index
    %c0_4 = arith.constant 0 : index
    %4 = vector.load %arg4[%c4, %c0_4] : memref<8x64xf32, #tpu.memory_space<vmem>>, vector<1x64xf32>
    %c5 = arith.constant 5 : index
    %c0_5 = arith.constant 0 : index
    %5 = vector.load %arg4[%c5, %c0_5] : memref<8x64xf32, #tpu.memory_space<vmem>>, vector<1x1xf32>
    %c0_6 = arith.constant 0 : index
    %c0_7 = arith.constant 0 : index
    %6 = vector.load %arg1[%c0_6, %c0_7] : memref<8x48xbf16, #tpu.memory_space<vmem>>, vector<8x48xbf16>
    %c0_8 = arith.constant 0 : index
    %c0_9 = arith.constant 0 : index
    %7 = vector.load %arg2[%c0_8, %c0_9] : memref<48x64xbf16, #tpu.memory_space<vmem>>, vector<48x64xbf16>
    %cst = arith.constant dense<0.000000e+00> : vector<8x64xf32>
    %8 = tpu.matmul %6, %7, %cst {dimension_numbers = #tpu.dot_dimension_numbers<[1], [0], [0], [1], [0, 0, 1, 1], [], []>} : vector<8x48xbf16>, vector<48x64xbf16>, vector<8x64xf32> -> vector<8x64xf32>
    %9 = vector.broadcast %0 : vector<1x64xf32> to vector<8x64xf32>
    %10 = arith.addf %8, %9 : vector<8x64xf32>
    %cst_10 = arith.constant 0.000000e+00 : f32
    %11 = vector.broadcast %cst_10 : f32 to vector<8x64xf32>
    %12 = arith.maximumf %10, %11 : vector<8x64xf32>
    %13 = vector.broadcast %1 : vector<1x64xf32> to vector<8x64xf32>
    %14 = arith.addf %12, %13 : vector<8x64xf32>
    %15 = arith.truncf %14 : vector<8x64xf32> to vector<8x64xbf16>
    %c0_11 = arith.constant 0 : index
    %c0_12 = arith.constant 0 : index
    %16 = vector.load %arg3[%c0_11, %c0_12] : memref<64x64xbf16, #tpu.memory_space<vmem>>, vector<64x64xbf16>
    %cst_13 = arith.constant dense<0.000000e+00> : vector<8x64xf32>
    %17 = tpu.matmul %15, %16, %cst_13 {dimension_numbers = #tpu.dot_dimension_numbers<[1], [0], [0], [1], [0, 0, 1, 1], [], []>} : vector<8x64xbf16>, vector<64x64xbf16>, vector<8x64xf32> -> vector<8x64xf32>
    %18 = vector.broadcast %2 : vector<1x64xf32> to vector<8x64xf32>
    %19 = arith.addf %17, %18 : vector<8x64xf32>
    %cst_14 = arith.constant 0.000000e+00 : f32
    %20 = vector.broadcast %cst_14 : f32 to vector<8x64xf32>
    %21 = arith.maximumf %19, %20 : vector<8x64xf32>
    %22 = vector.broadcast %3 : vector<1x64xf32> to vector<8x64xf32>
    %23 = arith.addf %21, %22 : vector<8x64xf32>
    %24 = vector.broadcast %4 : vector<1x64xf32> to vector<8x64xf32>
    %25 = arith.mulf %23, %24 : vector<8x64xf32>
    %cst_15 = arith.constant dense<0.000000e+00> : vector<8xf32>
    %26 = vector.multi_reduction <add>, %25, %cst_15 [1] : vector<8x64xf32> to vector<8xf32>
    %27 = vector.shape_cast %26 : vector<8xf32> to vector<8x1xf32>
    %28 = vector.broadcast %5 : vector<1x1xf32> to vector<8x1xf32>
    %29 = arith.addf %27, %28 : vector<8x1xf32>
    %c0_16 = arith.constant 0 : index
    %c0_17 = arith.constant 0 : index
    %30 = vector.load %arg5[%c0_16, %c0_17] : memref<8x1xf32, #tpu.memory_space<vmem>>, vector<8x1xf32>
    tpu.vector_store %arg5[%c0_16, %c0_17], %29 {strides = array<i32>} : memref<8x1xf32, #tpu.memory_space<vmem>>, vector<8x1xf32>,
    return
  }
  func.func @transform_0(%arg0: i32) -> (i32, i32) {
    %c0_i32 = arith.constant 0 : i32
    %c0_i32_0 = arith.constant 0 : i32
    return %arg0, %c0_i32 : i32, i32
  }
  func.func @transform_1(%arg0: i32) -> (i32, i32) {
    %c0_i32 = arith.constant 0 : i32
    %c0_i32_0 = arith.constant 0 : i32
    %c0_i32_1 = arith.constant 0 : i32
    return %c0_i32, %c0_i32_0 : i32, i32
  }
  func.func @transform_2(%arg0: i32) -> (i32, i32) {
    %c0_i32 = arith.constant 0 : i32
    %c0_i32_0 = arith.constant 0 : i32
    %c0_i32_1 = arith.constant 0 : i32
    return %c0_i32, %c0_i32_0 : i32, i32
  }
  func.func @transform_3(%arg0: i32) -> (i32, i32) {
    %c0_i32 = arith.constant 0 : i32
    %c0_i32_0 = arith.constant 0 : i32
    %c0_i32_1 = arith.constant 0 : i32
    return %c0_i32, %c0_i32_0 : i32, i32
  }
  func.func @transform_4(%arg0: i32) -> (i32, i32) {
    %c0_i32 = arith.constant 0 : i32
    %c0_i32_0 = arith.constant 0 : i32
    return %arg0, %c0_i32 : i32, i32
  }
}

</mosaic_0001>

<bundles_post_ra>
// kernel: tpu_custom_call.1
= control target key start
LH: loop header
LB: loop body
LE: loop exit
PB: predicated region body
PF: predicated region fallthrough
CT: control target
= control target key end

     0   :  { %9 = vsyncpa [#allocation3], 0  ;;  %s475_s0 = inlined_call_operand.hbm [shape: bf16[8,48], index: 0, kind: input, shape index: {}]   ;;  %s476_s1 = inlined_call_operand.hbm [shape: bf16[48,64], index: 1, kind: input, shape index: {}]   ;;  %s477_s2 = inlined_call_operand.hbm [shape: bf16[64,64], index: 2, kind: input, shape index: {}]   ;;  %s478_s3 = inlined_call_operand.vmem [shape: f32[8,64], index: 3, kind: input, shape index: {}]   ;;  %s479_s4 = inlined_call_operand.vmem [shape: f32[8,1], index: 4, kind: output, shape index: {}]  }
   0x1   :  { %10 = vsyncpa [#allocation5], 0  ;;  %s380_s15 = smov [#allocation4]   ;;  %s310_s19 = scalar_lea.hbm %s476_s1, 384 }
   0x2   :  { %s26_s16 = sshll.u32 %s380_s15, 4  ;;  %p311_p0 = scmp.ne.s32.totalorder %s476_s1, %s310_s19  ;;  %s27_s16 = int_to_ptr.vmem [resolvable:$true] %s26_s16 }
   0x3   :  { %p314_p1 = scmp.lt.u32.totalorder %s310_s19, %s476_s1 }
   0x5   :  { %p316_p2 = pnand %p314_p1, %p311_p0 }
   0x7   :  { %319 = shalt.err (!%p316_p2)
}
   0x8   :  { %s320_s24 = scalar_lea.vmem %s27_s16, 384  ;;  %p325_p4 = scmp.lt.s32.totalorder %s27_s16, %s27_s16 }
   0x9   :  { %p321_p3 = scmp.ne.s32.totalorder %s27_s16, %s320_s24  ;;  %p326_p5 = scmp.lt.s32.totalorder %s320_s24, %s320_s24 }
   0xb   :  { %p327_p6 = por %p326_p5, %p325_p4 }
   0xd   :  { %p328_p7 = pnand %p327_p6, %p321_p3 }
   0xf   :  { %331 = shalt.err (!%p328_p7)
}
  0x10   :  { %s381_s25 = smov 64   ;;  %s382_s26 = smov 4  }
  0x11   :  { %32 = dma.hbm_to_vmem [thread:$0]  %s476_s1, 384, %s27_s16, [#allocation5], %s381_s25, %s381_s25, %s382_s26  }
  0x12   :  { %s383_s29 = smov [#allocation2]   ;;  %s384_s5 = smov [#allocation6]  }
  0x13   :  { %s17_s30 = sshll.u32 %s383_s29, 4  ;;  %s38_s6 = sshll.u32 %s384_s5, 4  ;;  %s18_s30 = int_to_ptr.vmem [resolvable:$true] %s17_s30  ;;  %s39_s6 = int_to_ptr.vmem [resolvable:$true] %s38_s6 }
  0x14   :  { %s332_s9 = scalar_lea.hbm %s475_s0, 64 }
  0x15   :  { %p333_p8 = scmp.ne.s32.totalorder %s475_s0, %s332_s9  ;;  %p336_p9 = scmp.lt.u32.totalorder %s332_s9, %s475_s0 }
  0x17   :  { %p338_p10 = pnand %p336_p9, %p333_p8 }
  0x19   :  { %341 = shalt.err (!%p338_p10)
}
  0x1a   :  { %s342_s1 = scalar_lea.vmem %s18_s30, 64  ;;  %p347_p12 = scmp.lt.s32.totalorder %s18_s30, %s18_s30 }
  0x1b   :  { %p343_p11 = scmp.ne.s32.totalorder %s18_s30, %s342_s1  ;;  %p348_p13 = scmp.lt.s32.totalorder %s342_s1, %s342_s1 }
  0x1d   :  { %p349_p0 = por %p348_p13, %p347_p12 }
  0x1f   :  { %p350_p1 = pnand %p349_p0, %p343_p11 }
  0x21   :  { %353 = shalt.err (!%p350_p1)
}
  0x22   :  { %20 = dma.hbm_to_vmem [thread:$0]  %s475_s0, 64, %s18_s30, [#allocation3]  }
  0x23   :  { %s354_s18 = scalar_lea.hbm %s477_s2, 512 }
  0x24   :  { %p355_p2 = scmp.ne.s32.totalorder %s477_s2, %s354_s18  ;;  %p358_p3 = scmp.lt.u32.totalorder %s354_s18, %s477_s2 }
  0x26   :  { %p360_p4 = pnand %p358_p3, %p355_p2 }
  0x28   :  { %363 = shalt.err (!%p360_p4)
}
  0x29   :  { %s364_s23 = scalar_lea.vmem %s39_s6, 512  ;;  %p369_p6 = scmp.lt.s32.totalorder %s39_s6, %s39_s6 }
  0x2a   :  { %p365_p5 = scmp.ne.s32.totalorder %s39_s6, %s364_s23  ;;  %p370_p7 = scmp.lt.s32.totalorder %s364_s23, %s364_s23 }
  0x2c   :  { %p371_p8 = por %p370_p7, %p369_p6 }
  0x2e   :  { %p372_p9 = pnand %p371_p8, %p365_p5 }
  0x30   :  { %375 = shalt.err (!%p372_p9)
}
  0x31   :  { %44 = dma.hbm_to_vmem [thread:$0]  %s477_s2, 512, %s39_s6, [#allocation5], %s381_s25, %s381_s25, %s382_s26  }
  0x32   :  { %376 = dma.done.wait [#allocation3], 64  }
  0x33   :  { %377 = vsyncadd [#allocation3], 4294967232 }
  0x34   :  { %378 = dma.done.wait [#allocation5], 896  }
  0x35   :  { %379 = vsyncadd [#allocation5], 4294966400  ;;  %v385_v0 = vmov 0.0   ;;  %vm386_vm0 = vmmov 0   ;;  %v303_v1 = vld [vmem:[#allocation4] sm:$0xff]   ;;  %v304_v2 = vld [vmem:[#allocation4 + $0x8] sm:$0xff]  }
  0x36   :  { %274 = vmatprep.subr.bf16.mxu0 %v385_v0  ;;  %280 = vmatprep.mubr.msk.bf16.mxu0 %vm386_vm0, %v385_v0  ;;  %v306_v3 = vld [vmem:[#allocation6] sm:$0xff]   ;;  %v305_v4 = vld [vmem:[#allocation4 + $0x10] sm:$0xff]   ;;  %v307_v5 = vld [vmem:[#allocation6 + $0x8] sm:$0xff]   ;;  %vm92_vm1 = vcmask 392192   ;;  %vm179_vm2 = vcmask 523264   ;;  %vm242_vm3 = vcmask 7168  }
  0x37   :  { %284 = vmatprep.subr.bf16.mxu1 %v385_v0  ;;  %292 = vmatprep.mubr.msk.bf16.mxu1 %vm386_vm0, %v385_v0  ;;  %v63_v6 = vld [vmem:[#allocation2] sm:$0xf]  ;;  %v308_v7 = vld [vmem:[#allocation6 + $0x10] sm:$0xff]   ;;  %v309_v8 = vld [vmem:[#allocation6 + $0x18] sm:$0xff]  }
  0x38   :  { %275 = vmatpush3.bf16.msra.mxu0 %v303_v1  ;;  %285 = vmatpush3.bf16.msra.mxu1 %v306_v3  ;;  %v250_v9 = vld [vmem:[%s478_s3] ss:$0 sm:$0xff]  ;;  %v255_v13 = vld [vmem:[%s478_s3 + $0x1] ss:$0 sm:$0xff]  ;;  %v256_v19 = vld [vmem:[%s478_s3 + $0x2] ss:$0 sm:$0xff] }
  0x39   :  { %276 = vmatprep.subr.bf16.mxu0 %v385_v0  ;;  %286 = vmatprep.subr.bf16.mxu1 %v385_v0  ;;  %v262_v23 = vld [vmem:[%s478_s3 + $0x3] ss:$0 sm:$0xff]  ;;  %v263_v27 = vld [vmem:[%s478_s3 + $0x4] ss:$0 sm:$0xff]  ;;  %v264_v31 = vld [vmem:[%s478_s3 + $0x5] ss:$0 sm:$0xff] }
  0x3c   :  { %277 = vmatpush3.bf16.msra.mxu0 %v304_v2  ;;  %287 = vmatpush3.bf16.msra.mxu1 %v307_v5 }
  0x3d   :  { %278 = vmatprep.subr.bf16.mxu0 %v385_v0  ;;  %288 = vmatprep.subr.bf16.mxu1 %v385_v0 }
  0x40   :  { %279 = vmatpush3.bf16.msra.mxu0 %v305_v4  ;;  %289 = vmatpush3.bf16.msra.mxu1 %v308_v7 }
  0x41   :  { %290 = vmatprep.subr.bf16.mxu1 %v385_v0 }
  0x43   :  { %281 = vmatmul.mubr.msk.bf16.vlgmr.msra.gmra.mrb[0].mxu0 %vm92_vm1, %v63_v6 }
  0x44   :  { %291 = vmatpush3.bf16.msra.mxu1 %v309_v8 }
 0x116   :  { %v130_v10 = vpop.f32.mrb[0].mxu0 }
 0x117   :  { %v131_v11 = vadd.f32 %v250_v9, %v130_v10  ;;  %v282_v12 = vpop.f32.mrb[1].mxu0 }
 0x118   :  { %v133_v14 = vpop.f32.mrb[2].mxu0 }
 0x119   :  { %v136_v15 = vmax.f32 %v131_v11, 0.0  ;;  %v283_v16 = vpop.f32.mrb[3].mxu0 }
 0x11b   :  { %v141_v17 = vadd.f32 %v255_v13, %v136_v15 }
 0x11d   :  { %v142_v18 = vpack.c.bf16 %v141_v17, %v141_v17 }
 0x11f   :  { %293 = vmatmul.mubr.msk.bf16.vlgmr.msra.gmra.mrb[0].mxu1 %vm179_vm2, %v142_v18 }
 0x1f2   :  { %v217_v20 = vpop.f32.mrb[0].mxu1 }
 0x1f3   :  { %v218_v21 = vadd.f32 %v256_v19, %v217_v20  ;;  %v294_v22 = vpop.f32.mrb[1].mxu1 }
 0x1f4   :  { %v220_v24 = vpop.f32.mrb[2].mxu1 }
 0x1f5   :  { %v223_v25 = vmax.f32 %v218_v21, 0.0  ;;  %v295_v26 = vpop.f32.mrb[3].mxu1 }
 0x1f7   :  { %v228_v28 = vadd.f32 %v262_v23, %v223_v25 }
 0x1f9   :  { %v233_v29 = vmul.f32 %v263_v27, %v228_v28 }
 0x1fb   :  { %v234_v30 = vsel %vm179_vm2, %v233_v29, 0.0 }
 0x1fc   :  { %235 = vadd.xlane.f32.xlu0 %v234_v30 }
 0x289   :  { %v236_v32 = vpop.xlane.xlu0 %235 }
 0x28a   :  { %v241_v33 = vadd.f32 %v264_v31, %v236_v32 }
 0x28c   :  { %243 = vst.msk [vmem:[%s479_s4] sm:$0xff] %vm242_vm3, %v241_v33 }
 0x28d   :  { %248 = vsyncpa [#allocation3], 1 }
 0x28e   :  { %249 = vsyncpa [#allocation5], 1 }

</bundles_post_ra>
